<compile_context>
chip_gen: v7x
topology: tpu7x:2x2x1
jax: 0.10.0
libtpu: 0.0.40
codegen_flags: <defaults>
</compile_context>

<pallas_src>
import functools

import jax
import jax.numpy as jnp
from jax import lax
from jax.experimental import pallas as pl
from jax.experimental.pallas import tpu as pltpu


def _encoding_kernel(x_ref, cs2_ref, cw_ref, s_ref, sc2_ref, e_ref, asum_ref,
                     *, tn, tiles_per_core, n_valid, needs_mask):
    # x_ref   : (1, D, TN)    tile of tokens (tokens on lanes), bf16 stream
    # cs2_ref : (K, D)        2 * scale[:,None] * codewords (bf16, loop inv.)
    # cw_ref  : (K, D) f32    codewords                      (loop invariant)
    # s_ref   : (K, 1) f32    scale                          (loop invariant)
    # sc2_ref : (K, 1) f32    scale * ||C||^2                (loop invariant)
    # e_ref   : (1, 1, K, D)  f32 output block, resident across the N axis
    # asum_ref: (K, 1) f32    scratch accumulator for sum_n A
    n_idx = pl.program_id(2)
    n_last = pl.num_programs(2) - 1

    @pl.when(n_idx == 0)
    def _():
        e_ref[...] = jnp.zeros_like(e_ref)
        asum_ref[...] = jnp.zeros_like(asum_ref)

    Xb = x_ref[0]                          # (D, TN) streamed dtype (bf16)
    Xf = Xb.astype(jnp.float32)            # (D, TN) f32 for x2 & aggregation
    S = s_ref[...]                         # (K, 1)
    SC2 = sc2_ref[...]                     # (K, 1)

    # scaled L2 in (K, TN) layout:
    #   sl[k,n] = s[k]*||x_n||^2 + s[k]*||c_k||^2 - 2*s[k]*(x_n . c_k)
    x2 = jnp.sum(Xf * Xf, axis=0, keepdims=True)                       # (1, TN)
    xc2 = lax.dot_general(cs2_ref[...], Xb, (((1,), (0,)), ((), ())),
                          preferred_element_type=jnp.float32)          # (K, TN)
    sl = S * x2 + SC2 - xc2                                            # (K, TN)

    # softmax over K (sublane axis); tokens stay lane-dense
    m = jnp.max(sl, axis=0, keepdims=True)                             # (1, TN)
    p = jnp.exp(sl - m)                                                # (K, TN)
    denom = jnp.sum(p, axis=0, keepdims=True)                          # (1, TN)
    inv = pl.reciprocal(denom, approx=True)                            # EUP
    inv = inv * (2.0 - denom * inv)     # one Newton step -> f32 accurate, cheap
    A = p * inv                                                        # (K, TN)

    if needs_mask:
        # Zero padded token columns (global token index >= n_valid).
        tile = pl.program_id(0) * tiles_per_core + n_idx
        col = lax.broadcasted_iota(jnp.int32, (1, tn), 1) + tile * tn
        A = jnp.where(col < n_valid, A, 0.0)

    # aggregate: E_partial += A X^T (contract over N); asum += sum_n A
    e_ref[0, 0] += lax.dot_general(A, Xf, (((1,), (1,)), ((), ())),
                                   preferred_element_type=jnp.float32)  # (K, D)
    asum_ref[...] += jnp.sum(A, axis=1, keepdims=True)                  # (K, 1)

    @pl.when(n_idx == n_last)
    def _():
        e_ref[0, 0] -= cw_ref[...] * asum_ref[...]


def _vmem_capacity_bytes():
    try:
        cap = getattr(pltpu.get_tpu_info(), "vmem_capacity_bytes", None)
        if cap:
            return int(cap)
    except Exception:
        pass
    return 64 << 20  # conservative fallback (v7x-sized per-core VMEM)


def _vmem_budget_bytes():
    cap = _vmem_capacity_bytes()
    # v5e / v6e: 128 MiB physical -> ~96 MiB scoped; v7x: 64 MiB -> ~40 MiB.
    return (96 << 20) if cap >= (96 << 20) else (40 << 20)


def _pick_token_tile(n128, d, k, budget_bytes, tn_cap):
    # Rough per-token VMEM bytes: double-buffered bf16 x tile (4*d), the f32
    # upcast used for x2/aggregation (4*d), f32 softmax temporaries (~16*k).
    per_tok = 8 * d + 16 * k
    fixed = 6 * k * d * 4 + (4 << 20)        # invariants, output blocks, slack
    avail = max(budget_bytes - fixed, 1 << 20)
    tn = min(tn_cap, avail // per_tok, n128)
    return int(max(128, (tn // 128) * 128))


def _vmem_limit_bytes(tn, d, k, budget_bytes):
    need = (2 * d * tn * 2          # double-buffered bf16 x tile
            + d * tn * 4            # f32 upcast of the tile
            + 4 * k * tn * 4        # xc2 / sl / p / A temporaries
            + 6 * k * d * 4         # invariant + output blocks
            + (4 << 20))            # headroom
    return int(min(budget_bytes, max(need, 16 << 20)))


def encoding_forward(x_nchw, codewords, scale, *, tn_cap=8192,
                     x_dtype=jnp.bfloat16):
    """x_nchw: (B, D, H, W); codewords: (K, D); scale: (K,) -> E (B, K, D) f32."""
    B, D, H, W = x_nchw.shape
    K = codewords.shape[0]
    N = H * W

    budget = _vmem_budget_bytes()
    n128 = ((N + 127) // 128) * 128
    tn = _pick_token_tile(n128, D, K, budget, tn_cap)

    n_tiles = -(-n128 // tn)
    # Split the N reduction across the two v7x TensorCores when B is too small
    # to fill them (harmless serial split on 1-TC parts).
    n_split = 2 if (B == 1 and n_tiles >= 2) else 1
    if n_split > 1 and n_tiles % n_split:
        n_tiles += 1
    tiles_per_core = n_tiles // n_split
    n_pad = n_tiles * tn
    needs_mask = (n_pad != N)

    # Free reshape (no HBM transpose); stream x in bf16.
    x_bdn = x_nchw.reshape(B, D, N).astype(x_dtype)
    if n_pad != N:
        x_bdn = jnp.pad(x_bdn, ((0, 0), (0, 0), (0, n_pad - N)))

    cw = codewords.astype(jnp.float32)                    # (K, D)
    s = scale.astype(jnp.float32)                         # (K,)
    cs2 = (2.0 * s[:, None] * cw).astype(x_dtype)         # (K, D) matmul operand
    sc2 = (s * jnp.sum(cw * cw, axis=1))[:, None]         # (K, 1) scale*||C||^2
    s_col = s[:, None]                                    # (K, 1)

    kernel = functools.partial(_encoding_kernel, tn=tn,
                               tiles_per_core=tiles_per_core,
                               n_valid=N, needs_mask=needs_mask)

    grid = (n_split, B, tiles_per_core)
    out = pl.pallas_call(
        kernel,
        out_shape=jax.ShapeDtypeStruct((n_split, B, K, D), jnp.float32),
        grid_spec=pltpu.PrefetchScalarGridSpec(
            num_scalar_prefetch=0,
            grid=grid,
            in_specs=[
                pl.BlockSpec((1, D, tn),
                             lambda c, b, n: (b, 0, c * tiles_per_core + n)),
                pl.BlockSpec((K, D), lambda c, b, n: (0, 0)),   # 2*scale*C (bf16)
                pl.BlockSpec((K, D), lambda c, b, n: (0, 0)),   # C (f32)
                pl.BlockSpec((K, 1), lambda c, b, n: (0, 0)),   # scale
                pl.BlockSpec((K, 1), lambda c, b, n: (0, 0)),   # scale*||C||^2
            ],
            out_specs=pl.BlockSpec((1, 1, K, D), lambda c, b, n: (c, b, 0, 0)),
            scratch_shapes=[
                pltpu.VMEM((K, 1), jnp.float32),   # sum_n A accumulator
            ],
        ),
        compiler_params=pltpu.CompilerParams(
            dimension_semantics=("parallel", "parallel", "arbitrary"),
            vmem_limit_bytes=_vmem_limit_bytes(tn, D, K, budget),
        ),
    )(x_bdn, cs2, cw, s_col, sc2)

    # TODO(synk): if a profile shows an exposed DMA bubble after the larger
    # tiles, add pipeline_mode=pl.Buffered(3) on the x BlockSpec only.
    return out[0] if n_split == 1 else jnp.sum(out, axis=0)


def encoding_reference(x_nchw, codewords, scale):
    """Pure-JAX reference mirroring the PyTorch forward exactly (f32)."""
    B, D = x_nchw.shape[:2]
    X = jnp.transpose(x_nchw.reshape(B, D, -1), (0, 2, 1))            # (B, N, D)
    diff = X[:, :, None, :] - codewords[None, None, :, :]             # (B, N, K, D)
    SL = scale[None, None, :] * jnp.sum(diff * diff, axis=3)          # (B, N, K)
    A = jax.nn.softmax(SL, axis=2)                                    # (B, N, K)
    return jnp.sum(A[:, :, :, None] * diff, axis=1)                   # (B, K, D)


if __name__ == "__main__":
    B, D, K, H, W = 2, 32, 16, 16, 16

    key = jax.random.PRNGKey(0)
    kx, kc, ks, kx2, kx3 = jax.random.split(key, 5)

    # deterministic parameter init matching the module's __init__
    std1 = 1.0 / (K * D) ** 0.5
    codewords = jax.random.uniform(kc, (K, D), jnp.float32, minval=-std1, maxval=std1)
    scale = jax.random.uniform(ks, (K,), jnp.float32, minval=-1.0, maxval=0.0)

    # Main shape (N multiple of 128, no masking).
    x = jax.random.normal(kx, (B, D, H, W), jnp.float32)
    E = jax.block_until_ready(encoding_forward(x, codewords, scale))
    assert E.shape == (B, K, D)
    # The kernel streams x in bf16; compare against a reference fed the same
    # bf16-quantised x so only in-kernel numerics are being checked.
    E_ref = encoding_reference(x.astype(jnp.bfloat16).astype(jnp.float32),
                               codewords, scale)
    err = jnp.max(jnp.abs(E - E_ref))
    assert jnp.allclose(E, E_ref, atol=3e-3, rtol=3e-3), f"max abs err {err}"

    # Ragged-N path (N=81 -> padded to 128, padded tokens masked in-kernel).
    x_r = jax.random.normal(kx2, (B, D, 9, 9), jnp.float32)
    E_r = jax.block_until_ready(encoding_forward(x_r, codewords, scale))
    E_r_ref = encoding_reference(x_r.astype(jnp.bfloat16).astype(jnp.float32),
                                 codewords, scale)
    err_r = jnp.max(jnp.abs(E_r - E_r_ref))
    assert jnp.allclose(E_r, E_r_ref, atol=3e-3, rtol=3e-3), f"max abs err {err_r}"

    # B == 1 path with a small forced tile so the 2-way N-split is exercised.
    x_s = jax.random.normal(kx3, (1, D, 32, 32), jnp.float32)
    E_s = jax.block_until_ready(
        encoding_forward(x_s, codewords, scale, tn_cap=256))
    E_s_ref = encoding_reference(x_s.astype(jnp.bfloat16).astype(jnp.float32),
                                 codewords, scale)
    err_s = jnp.max(jnp.abs(E_s - E_s_ref))
    assert jnp.allclose(E_s, E_s_ref, atol=3e-3, rtol=3e-3), f"max abs err {err_s}"

    print("KERNEL_OK")
</pallas_src>

<mosaic_0001>
module attributes {stable_mosaic.version = 11 : i64} {
  func.func @_encoding_kernel(%arg0: i32, %arg1: i32, %arg2: i32, %arg3: memref<1x32x256xbf16, #tpu.memory_space<vmem>>, %arg4: memref<16x32xbf16, #tpu.memory_space<vmem>>, %arg5: memref<16x32xf32, #tpu.memory_space<vmem>>, %arg6: memref<16x1xf32, #tpu.memory_space<vmem>>, %arg7: memref<16x1xf32, #tpu.memory_space<vmem>>, %arg8: memref<1x1x16x32xf32, #tpu.memory_space<vmem>>, %arg9: memref<16x1xf32, #tpu.memory_space<vmem>>) attributes {dimension_semantics = [#tpu.dimension_semantics<parallel>, #tpu.dimension_semantics<parallel>, #tpu.dimension_semantics<arbitrary>], iteration_bounds = array<i64: 1, 2, 1>, scalar_prefetch = 0 : i64, scratch_operands = 1 : i64, tpu.core_type = #tpu.core_type<tc>, window_params = [{transform_indices = @transform_0, window_bounds = array<i64: 1, 32, 256>}, {pipeline_mode = #tpu.pipeline_mode<synchronous>, transform_indices = @transform_1, window_bounds = array<i64: 16, 32>}, {pipeline_mode = #tpu.pipeline_mode<synchronous>, transform_indices = @transform_2, window_bounds = array<i64: 16, 32>}, {pipeline_mode = #tpu.pipeline_mode<synchronous>, transform_indices = @transform_3, window_bounds = array<i64: 16, 1>}, {pipeline_mode = #tpu.pipeline_mode<synchronous>, transform_indices = @transform_4, window_bounds = array<i64: 16, 1>}, {transform_indices = @transform_5, window_bounds = array<i64: 1, 1, 16, 32>}]} {
    %c0_i32 = arith.constant 0 : i32
    %0 = arith.cmpi eq, %arg2, %c0_i32 : i32
    %1 = arith.extui %0 : i1 to i32
    %c0_i32_0 = arith.constant 0 : i32
    %2 = arith.cmpi ne, %1, %c0_i32_0 : i32
    scf.if %2 {
      %cst_29 = arith.constant 0.000000e+00 : f32
      %48 = vector.broadcast %cst_29 : f32 to vector<1x1x16x32xf32>
      %c0_30 = arith.constant 0 : index
      %c0_31 = arith.constant 0 : index
      %c0_32 = arith.constant 0 : index
      %c0_33 = arith.constant 0 : index
      %49 = vector.load %arg8[%c0_30, %c0_31, %c0_32, %c0_33] : memref<1x1x16x32xf32, #tpu.memory_space<vmem>>, vector<1x1x16x32xf32>
      tpu.vector_store %arg8[%c0_30, %c0_31, %c0_32, %c0_33], %48 {strides = array<i32>} : memref<1x1x16x32xf32, #tpu.memory_space<vmem>>, vector<1x1x16x32xf32>,
      %cst_34 = arith.constant 0.000000e+00 : f32
      %50 = vector.broadcast %cst_34 : f32 to vector<16x1xf32>
      %c0_35 = arith.constant 0 : index
      %c0_36 = arith.constant 0 : index
      %51 = vector.load %arg9[%c0_35, %c0_36] : memref<16x1xf32, #tpu.memory_space<vmem>>, vector<16x1xf32>
      tpu.vector_store %arg9[%c0_35, %c0_36], %50 {strides = array<i32>} : memref<16x1xf32, #tpu.memory_space<vmem>>, vector<16x1xf32>,
    } else {
    }
    %c0 = arith.constant 0 : index
    %c0_1 = arith.constant 0 : index
    %c0_2 = arith.constant 0 : index
    %3 = vector.load %arg3[%c0, %c0_1, %c0_2] : memref<1x32x256xbf16, #tpu.memory_space<vmem>>, vector<1x32x256xbf16>
    %4 = vector.shape_cast %3 : vector<1x32x256xbf16> to vector<32x256xbf16>
    %5 = arith.extf %4 : vector<32x256xbf16> to vector<32x256xf32>
    %c0_3 = arith.constant 0 : index
    %c0_4 = arith.constant 0 : index
    %6 = vector.load %arg6[%c0_3, %c0_4] : memref<16x1xf32, #tpu.memory_space<vmem>>, vector<16x1xf32>
    %c0_5 = arith.constant 0 : index
    %c0_6 = arith.constant 0 : index
    %7 = vector.load %arg7[%c0_5, %c0_6] : memref<16x1xf32, #tpu.memory_space<vmem>>, vector<16x1xf32>
    %8 = arith.mulf %5, %5 : vector<32x256xf32>
    %cst = arith.constant dense<0.000000e+00> : vector<256xf32>
    %9 = vector.multi_reduction <add>, %8, %cst [0] : vector<32x256xf32> to vector<256xf32>
    %10 = vector.shape_cast %9 : vector<256xf32> to vector<1x256xf32>
    %c0_7 = arith.constant 0 : index
    %c0_8 = arith.constant 0 : index
    %11 = vector.load %arg4[%c0_7, %c0_8] : memref<16x32xbf16, #tpu.memory_space<vmem>>, vector<16x32xbf16>
    %cst_9 = arith.constant dense<0.000000e+00> : vector<16x256xf32>
    %12 = tpu.matmul %11, %4, %cst_9 {dimension_numbers = #tpu.dot_dimension_numbers<[1], [0], [0], [1], [0, 0, 1, 1], [], []>} : vector<16x32xbf16>, vector<32x256xbf16>, vector<16x256xf32> -> vector<16x256xf32>
    %13 = vector.broadcast %6 : vector<16x1xf32> to vector<16x256xf32>
    %14 = vector.broadcast %10 : vector<1x256xf32> to vector<16x256xf32>
    %15 = arith.mulf %13, %14 : vector<16x256xf32>
    %16 = vector.broadcast %7 : vector<16x1xf32> to vector<16x256xf32>
    %17 = arith.addf %15, %16 : vector<16x256xf32>
    %18 = arith.subf %17, %12 : vector<16x256xf32>
    %cst_10 = arith.constant dense<0xFF800000> : vector<256xf32>
    %19 = vector.multi_reduction <maximumf>, %18, %cst_10 [0] : vector<16x256xf32> to vector<256xf32>
    %20 = vector.shape_cast %19 : vector<256xf32> to vector<1x256xf32>
    %21 = vector.broadcast %20 : vector<1x256xf32> to vector<16x256xf32>
    %22 = arith.subf %18, %21 : vector<16x256xf32>
    %23 = math.exp %22 : vector<16x256xf32>
    %cst_11 = arith.constant dense<0.000000e+00> : vector<256xf32>
    %24 = vector.multi_reduction <add>, %23, %cst_11 [0] : vector<16x256xf32> to vector<256xf32>
    %25 = vector.shape_cast %24 : vector<256xf32> to vector<1x256xf32>
    %26 = tpu.reciprocal %25 {approx = true} : vector<1x256xf32> -> vector<1x256xf32>
    %27 = arith.mulf %25, %26 : vector<1x256xf32>
    %cst_12 = arith.constant 2.000000e+00 : f32
    %28 = vector.broadcast %cst_12 : f32 to vector<1x256xf32>
    %29 = arith.subf %28, %27 : vector<1x256xf32>
    %30 = arith.mulf %26, %29 : vector<1x256xf32>
    %31 = vector.broadcast %30 : vector<1x256xf32> to vector<16x256xf32>
    %32 = arith.mulf %23, %31 : vector<16x256xf32>
    %c0_13 = arith.constant 0 : index
    %c0_14 = arith.constant 0 : index
    %c0_15 = arith.constant 0 : index
    %c0_16 = arith.constant 0 : index
    %33 = vector.load %arg8[%c0_13, %c0_14, %c0_15, %c0_16] : memref<1x1x16x32xf32, #tpu.memory_space<vmem>>, vector<1x1x16x32xf32>
    %34 = vector.shape_cast %33 : vector<1x1x16x32xf32> to vector<16x32xf32>
    %cst_17 = arith.constant dense<0.000000e+00> : vector<16x32xf32>
    %35 = tpu.matmul %32, %5, %cst_17 {dimension_numbers = #tpu.dot_dimension_numbers<[1], [1], [0], [0], [0, 0, 1, 0], [], []>} : vector<16x256xf32>, vector<32x256xf32>, vector<16x32xf32> -> vector<16x32xf32>
    %36 = arith.addf %34, %35 : vector<16x32xf32>
    %c0_18 = arith.constant 0 : index
    %c0_19 = arith.constant 0 : index
    %c0_20 = arith.constant 0 : index
    %c0_21 = arith.constant 0 : index
    %37 = vector.load %arg8[%c0_18, %c0_19, %c0_20, %c0_21] : memref<1x1x16x32xf32, #tpu.memory_space<vmem>>, vector<1x1x16x32xf32>
    %38 = vector.shape_cast %37 : vector<1x1x16x32xf32> to vector<16x32xf32>
    %39 = vector.shape_cast %36 : vector<16x32xf32> to vector<1x1x16x32xf32>
    tpu.vector_store %arg8[%c0_18, %c0_19, %c0_20, %c0_21], %39 {strides = array<i32>} : memref<1x1x16x32xf32, #tpu.memory_space<vmem>>, vector<1x1x16x32xf32>,
    %c0_22 = arith.constant 0 : index
    %c0_23 = arith.constant 0 : index
    %40 = vector.load %arg9[%c0_22, %c0_23] : memref<16x1xf32, #tpu.memory_space<vmem>>, vector<16x1xf32>
    %cst_24 = arith.constant dense<0.000000e+00> : vector<16xf32>
    %41 = vector.multi_reduction <add>, %32, %cst_24 [1] : vector<16x256xf32> to vector<16xf32>
    %42 = vector.shape_cast %41 : vector<16xf32> to vector<16x1xf32>
    %43 = arith.addf %40, %42 : vector<16x1xf32>
    %c0_25 = arith.constant 0 : index
    %c0_26 = arith.constant 0 : index
    %44 = vector.load %arg9[%c0_25, %c0_26] : memref<16x1xf32, #tpu.memory_space<vmem>>, vector<16x1xf32>
    tpu.vector_store %arg9[%c0_25, %c0_26], %43 {strides = array<i32>} : memref<16x1xf32, #tpu.memory_space<vmem>>, vector<16x1xf32>,
    %c0_i32_27 = arith.constant 0 : i32
    %45 = arith.cmpi eq, %arg2, %c0_i32_27 : i32
    %46 = arith.extui %45 : i1 to i32
    %c0_i32_28 = arith.constant 0 : i32
    %47 = arith.cmpi ne, %46, %c0_i32_28 : i32
    scf.if %47 {
      %c0_29 = arith.constant 0 : index
      %c0_30 = arith.constant 0 : index
      %c0_31 = arith.constant 0 : index
      %c0_32 = arith.constant 0 : index
      %48 = vector.load %arg8[%c0_29, %c0_30, %c0_31, %c0_32] : memref<1x1x16x32xf32, #tpu.memory_space<vmem>>, vector<1x1x16x32xf32>
      %49 = vector.shape_cast %48 : vector<1x1x16x32xf32> to vector<16x32xf32>
      %c0_33 = arith.constant 0 : index
      %c0_34 = arith.constant 0 : index
      %50 = vector.load %arg5[%c0_33, %c0_34] : memref<16x32xf32, #tpu.memory_space<vmem>>, vector<16x32xf32>
      %c0_35 = arith.constant 0 : index
      %c0_36 = arith.constant 0 : index
      %51 = vector.load %arg9[%c0_35, %c0_36] : memref<16x1xf32, #tpu.memory_space<vmem>>, vector<16x1xf32>
      %52 = vector.broadcast %51 : vector<16x1xf32> to vector<16x32xf32>
      %53 = arith.mulf %50, %52 : vector<16x32xf32>
      %54 = arith.subf %49, %53 : vector<16x32xf32>
      %c0_37 = arith.constant 0 : index
      %c0_38 = arith.constant 0 : index
      %c0_39 = arith.constant 0 : index
      %c0_40 = arith.constant 0 : index
      %55 = vector.load %arg8[%c0_37, %c0_38, %c0_39, %c0_40] : memref<1x1x16x32xf32, #tpu.memory_space<vmem>>, vector<1x1x16x32xf32>
      %56 = vector.shape_cast %55 : vector<1x1x16x32xf32> to vector<16x32xf32>
      %57 = vector.shape_cast %54 : vector<16x32xf32> to vector<1x1x16x32xf32>
      tpu.vector_store %arg8[%c0_37, %c0_38, %c0_39, %c0_40], %57 {strides = array<i32>} : memref<1x1x16x32xf32, #tpu.memory_space<vmem>>, vector<1x1x16x32xf32>,
    } else {
    }
    return
  }
  func.func @transform_0(%arg0: i32, %arg1: i32, %arg2: i32) -> (i32, i32, i32) {
    %c1_i32 = arith.constant 1 : i32
    %0 = arith.muli %arg0, %c1_i32 : i32
    %1 = arith.addi %0, %arg2 : i32
    %c0_i32 = arith.constant 0 : i32
    %c0_i32_0 = arith.constant 0 : i32
    return %arg1, %c0_i32, %1 : i32, i32, i32
  }
  func.func @transform_1(%arg0: i32, %arg1: i32, %arg2: i32) -> (i32, i32) {
    %c0_i32 = arith.constant 0 : i32
    %c0_i32_0 = arith.constant 0 : i32
    %c0_i32_1 = arith.constant 0 : i32
    return %c0_i32, %c0_i32_0 : i32, i32
  }
  func.func @transform_2(%arg0: i32, %arg1: i32, %arg2: i32) -> (i32, i32) {
    %c0_i32 = arith.constant 0 : i32
    %c0_i32_0 = arith.constant 0 : i32
    %c0_i32_1 = arith.constant 0 : i32
    return %c0_i32, %c0_i32_0 : i32, i32
  }
  func.func @transform_3(%arg0: i32, %arg1: i32, %arg2: i32) -> (i32, i32) {
    %c0_i32 = arith.constant 0 : i32
    %c0_i32_0 = arith.constant 0 : i32
    %c0_i32_1 = arith.constant 0 : i32
    return %c0_i32, %c0_i32_0 : i32, i32
  }
  func.func @transform_4(%arg0: i32, %arg1: i32, %arg2: i32) -> (i32, i32) {
    %c0_i32 = arith.constant 0 : i32
    %c0_i32_0 = arith.constant 0 : i32
    %c0_i32_1 = arith.constant 0 : i32
    return %c0_i32, %c0_i32_0 : i32, i32
  }
  func.func @transform_5(%arg0: i32, %arg1: i32, %arg2: i32) -> (i32, i32, i32, i32) {
    %c0_i32 = arith.constant 0 : i32
    %c0_i32_0 = arith.constant 0 : i32
    %c0_i32_1 = arith.constant 0 : i32
    return %arg0, %arg1, %c0_i32, %c0_i32_0 : i32, i32, i32, i32
  }
}

</mosaic_0001>

<bundles_post_ra>
// kernel: tpu_custom_call.1
= control target key start
LH: loop header
LB: loop body
LE: loop exit
PB: predicated region body
PF: predicated region fallthrough
CT: control target
= control target key end

     0   :  { %10 = vsyncpa [#allocation4], 0  ;;  %s1230_s0 = inlined_call_operand.hbm [shape: bf16[2,32,256], index: 0, kind: input, shape index: {}]   ;;  %s1231_s1 = inlined_call_operand.vmem [shape: bf16[16,32], index: 1, kind: input, shape index: {}]   ;;  %s1232_s2 = inlined_call_operand.vmem [shape: f32[16,32], index: 2, kind: input, shape index: {}]   ;;  %s1233_s3 = inlined_call_operand.vmem [shape: f32[16,1], index: 3, kind: input, shape index: {}]   ;;  %s1234_s4 = inlined_call_operand.vmem [shape: f32[16,1], index: 4, kind: input, shape index: {}]   ;;  %s1235_s5 = inlined_call_operand.hbm [shape: f32[1,2,16,32], index: 5, kind: output, shape index: {}]  }
   0x1   :  { %12 = vsyncpa [#allocation4 + $0x1], 0 }
   0x2   :  { %13 = vsyncpa [#allocation5], 0 }
   0x3   :  { %15 = vsyncpa [#allocation5 + $0x1], 0  ;;  %s1005_s18 = smov 0   ;;  %s1007_s19 = smov 0  }
   0x4   :  { %s1009_s20 = smov 0   ;;  %s1011_s21 = smov 0  }
   0x5   :  { %s1013_s22 = smov 0   ;;  %s1015_s23 = smov 0  }
   0x6 LB: > { %s710_s24 = sadd.s32 4294967295, %s964_s23   ;;  %s711_s25 = sadd.s32 4294967294, %s964_s23   ;;  %s964_s23 = sphi %s1015_s23, %s21_s23   ;;  %s960_s22 = sphi %s1013_s22, %s1250_s22   ;;  %s956_s21 = sphi %s1011_s21, %s1249_s21   ;;  %s952_s20 = sphi %s1009_s20, %s1248_s20   ;;  %s948_s19 = sphi %s1007_s19, %s1247_s19   ;;  %s944_s18 = sphi %s1005_s18, %s1246_s18  }
   0x7   : > { %s36_s26 = sadd.s32 1, %s960_s22  ;;  %s51_s27 = sadd.s32 1, %s952_s20 }
   0x8   : > { %p38_p0 = scmp.ge.s32.totalorder %s36_s26, 2  ;;  %p58_p1 = scmp.ne.s32.totalorder %s952_s20, %s948_s19 }
   0x9   : > { %p59_p2 = scmp.eq.s32.totalorder %s964_s23, 0  ;;  %p64_p3 = scmp.ne.s32.totalorder %s948_s19, %s944_s18 }
   0xa   : > { %s1252_s26 = smov (%p38_p0, %s36_s26), 0  ;;  %p65_p5 = scmp.eq.s32.totalorder %s710_s24, 0 }
   0xb   : > { %p1046_p4 = por %p59_p2, %p58_p1  ;;  %s46_s29 = ssub.s32 %s960_s22, %s1252_s26 }
   0xc   : > { %p174_p6 = scmp.eq.s32.totalorder %s710_s24, 1  ;;  %p49_p7 = scmp.eq.s32.totalorder %s46_s29, 0 }
   0xd   : > { %p1052_p8 = por %p65_p5, %p64_p3  ;;  %p180_p10 = scmp.eq.s32.totalorder %s711_s25, 1 }
   0xe   : > { %p1056_p9 = por %p174_p6, %p58_p1  ;;  %p757_p13 = scmp.lt.s32.totalorder %s964_s23, 2 }
   0xf   : > { %s1061_s7 = scalar_select %p49_p7, %s952_s20, %s51_s27  }
  0x10   : > { %s1239_s6 = scalar_select %p1056_p9, 1, 0 }
  0x11   : > { %p1063_p11 = por %p180_p10, %p64_p3  ;;  %s212_s9 = sand.u32 1, %s952_s20  }
  0x12   : > { %s714_s10 = sshll.u32 %s212_s9, 5  ;;  %s731_s11 = sshll.u32 %s960_s22, 9 }
  0x13   : > { %s1240_s8 = scalar_select %p1063_p11, 1, 0 }
  0x14   : > { %s1074_s14 = scalar_lea.hbm %s1230_s0, %s731_s11  ;;  %s216_s15 = scalar_lea.vmem [#allocation3], %s714_s10 }
  0x15   : > { %s226_s16 = sshll.u32 %s216_s15, 4  ;;  %p1080_p0 = pnand %p757_p13, %p1046_p4  ;;  %s1076_s16 = int_to_ptr.vmem [resolvable:$true] %s226_s16 }
  0x16   : > { %s1085_s24 = scalar_lea.sflag [#allocation4], %s212_s9  ;;  %s832_s25 = scalar_lea.hbm %s1074_s14, 512 }
  0x17   : > { %p833_p2 = scmp.ne.s32.totalorder %s1074_s14, %s832_s25  ;;  %p834_p3 = pneg %p1080_p0 }
  0x18   : > { %s837_s28 = scalar_lea.hbm %s1230_s0, 1024  ;;  %p838_p4 = scmp.lt.u32.totalorder %s1074_s14, %s1230_s0 }
  0x19   : > { %p835_p5 = pnand %p834_p3, %p833_p2  ;;  %p839_p7 = scmp.lt.u32.totalorder %s837_s28, %s832_s25 }
  0x1a   : > { %p841_p13 = scmp.lt.u32.totalorder %s832_s25, %s1074_s14 }
  0x1b   : > { %p836_p6 = pneg %p835_p5  ;;  %p840_p10 = por %p839_p7, %p838_p4 }
  0x1d   : > { %p842_p12 = por %p841_p13, %p840_p10 }
  0x1f   : > { %p843_p1 = pnand %p842_p12, %p836_p6 }
  0x21   : > { %846 = shalt.err (!%p843_p1)
}
  0x22   : > { %s847_s9 = scalar_lea.vmem %s1076_s16, 512  ;;  %s966_s12 = smov [#allocation3]  }
  0x23   : > { %p848_p2 = scmp.ne.s32.totalorder %s1076_s16, %s847_s9  ;;  %s852_s13 = sshll.u32 %s966_s12, 4  ;;  %s853_s13 = int_to_ptr.vmem [resolvable:$false] %s852_s13 }
  0x24   : > { %s854_s15 = scalar_lea.vmem %s853_s13, 1024  ;;  %p855_p9 = scmp.lt.s32.totalorder %s1076_s16, %s853_s13 }
  0x25   : > { %p850_p5 = pnand %p848_p2, %p834_p3  ;;  %p856_p4 = scmp.lt.s32.totalorder %s854_s15, %s847_s9 }
  0x27   : > { %p851_p11 = pneg %p850_p5  ;;  %p857_p7 = por %p856_p4, %p855_p9 }
  0x29   : > { %p858_p10 = pnand %p857_p7, %p851_p11 }
  0x2b   : > { %861 = shalt.err (!%p858_p10)
}
  0x2c   : > { %s967_s25 = smov 128   ;;  %s968_s27 = smov 8  }
  0x2d   : > { %752 = dma.hbm_to_vmem [thread:$0]  (!%p1080_p0), %s1074_s14, 512, %s1076_s16, %s1085_s24, %s967_s25, %s967_s25, %s968_s27  }
  0x2e   : > { %p234_p12 = scmp.lt.s32.totalorder %s964_s23, 3  ;;  %p1242_p1 = scmp.ge.s32.totalorder %s964_s23, 1 }
  0x30   : > { %p235_p3 = pnand %p1242_p1, %p234_p12 }
  0x31   : > { %s1117_s29 = sand.u32 (!%p235_p3), 1, %s948_s19  }
  0x32   : > { %238 = sbr.rel (%p235_p3) target bundleno = 651 (0x28b), region = 40  ;;  %s718_s28 = sshll.u32 (!%p235_p3), %s1117_s29, 5 }
  0x33   : > { %s241_s10 = scalar_lea.sflag (!%p235_p3), [#allocation4], %s1117_s29  ;;  %s244_s11 = scalar_lea.vmem (!%p235_p3), [#allocation3], %s718_s28 }
  0x39   : > { %915 = dma.done.wait (%p1052_p8), %s241_s10, 512  }
  0x3a   : > { %917 = vsyncadd (%p1052_p8), %s241_s10, 4294966784  ;;  %v969_v0 = vmov 0   ;;  %v284_v1 = vld [vmem:[%s244_s11] sm:$0xff]  ;;  %v285_v2 = vld [vmem:[%s244_s11 + $0x8] sm:$0xff]  ;;  %vm278_vm0 = vcmask 261120   ;;  %v932_v21 = vlaneseq  ;;  %vm281_vm1 = vcmask 7168  }
  0x3b   : > { %389 = vmatprep.mubr.bf16.mxu0 %v969_v0  ;;  %813 = vset.pattern.permute.xlu0 %v969_v0  ;;  %v286_v3 = vld [vmem:[%s244_s11 + $0x10] sm:$0xff]  ;;  %v722_v4 = vcombine.high %v284_v1, %v285_v2  ;;  %v721_v5 = vcombine.low %v284_v1, %v285_v2  ;;  %v287_v6 = vld [vmem:[%s244_s11 + $0x18] sm:$0xff]  ;;  %922 = vmul.bf16.f32.vacc0 %v284_v1, %v284_v1  ;;  %v970_v18 = vmov 1935823168   ;;  %s719_s27 = sshll.u32 %s1117_s29, 4  ;;  %s732_s17 = sshll.u32 %s956_s21, 8 }
  0x3c   : > { %814 = vset.pattern.permute.xlu1 %v969_v0  ;;  %v296_v7 = vld [vmem:[%s1233_s3] sm:$0xff]  ;;  %v297_v9 = vld [vmem:[%s1233_s3 + $0x8] sm:$0xff]  ;;  %923 = vmac.bf16.f32.vacc0 %v285_v2, %v285_v2  ;;  %v724_v10 = vcombine.high %v286_v3, %v287_v6  ;;  %v723_v11 = vcombine.low %v286_v3, %v287_v6  ;;  %v930_v19 = vunpack.c.l.s4 %v970_v18  ;;  %s1146_s28 = scalar_lea.vmem [#allocation6], %s719_s27  ;;  %s1175_s12 = scalar_lea.hbm %s1235_s5, %s732_s17 }
  0x3d   : > { %v298_v8 = vld [vmem:[%s1234_s4] sm:$0xff]  ;;  %402 = vperm.xlu0 %813, %v296_v7   ;;  %357 = vmatprep.subr.bf16.mxu0 %v722_v4  ;;  %v299_v12 = vld [vmem:[%s1234_s4 + $0x8] sm:$0xff]  ;;  %924 = vmac.bf16.f32.vacc0 %v286_v3, %v286_v3  ;;  %v933_v22 = vshrl.u32 %v932_v21, 7  ;;  %v971_v26 = vmov 0.0   ;;  %s619_s24 = sshll.u32 %s1146_s28, 4  ;;  %s604_s21 = scalar_lea.sflag [#allocation5], %s1117_s29  ;;  %s1177_s24 = int_to_ptr.vmem [resolvable:$true] %s619_s24 }
  0x3e   : > { %416 = vperm.xlu1 %814, %v298_v8   ;;  %358 = vmatpush1.bf16.msra.mxu0 %v721_v5  ;;  %v819_v13 = vld [vmem:[%s1231_s1] sm:$0xff]   ;;  %925 = vmac.bf16.f32.vacc0 %v287_v6, %v287_v6  ;;  %v931_v20 = vunpack.c.0.s8 %v930_v19  ;;  %283 = vst.msk [vmem:[#allocation2 + $0x8] sm:$0xff] %vm281_vm1, %v971_v26  ;;  %282 = vst.msk [vmem:[#allocation2] sm:$0xff] %vm281_vm1, %v971_v26  ;;  %s862_s13 = scalar_lea.vmem %s1177_s24, 256  ;;  %p1243_p9 = scmp.ne.s32.totalorder %s1239_s6, 0 }
  0x3f   : > { %734 = vmatprep.subr.bf16.mxu1 %v722_v4  ;;  %359 = vmatprep.subr.bf16.mxu0 %v724_v10  ;;  %279 = vst.msk [vmem:[%s1146_s28] sm:$0xff] %vm278_vm0, %v971_v26  ;;  %280 = vst.msk [vmem:[%s1146_s28 + $0x8] sm:$0xff] %vm278_vm0, %v971_v26  ;;  %p863_p8 = scmp.ne.s32.totalorder %s1177_s24, %s862_s13  ;;  %s972_s15 = smov [#allocation6]  }
  0x40   : > { %736 = vmatpush1.bf16.xpose.msra.mxu1 %v721_v5  ;;  %v926_v14 = vmovacc.add.low.vacc0  ;;  %v934_v23 = vsub.s32 %v931_v20, %v933_v22  ;;  %s866_s25 = sshll.u32 %s972_s15, 4  ;;  %s867_s25 = int_to_ptr.vmem [resolvable:$false] %s866_s25 }
  0x41   : > { %407 = vperm.xlu0 %813, %v297_v9   ;;  %v927_v15 = vmovacc.add.high.vacc0  ;;  %738 = vmatprep.subr.bf16.mxu1 %v724_v10  ;;  %p864_p11 = pnand %p863_p8, %p1243_p9  ;;  %s868_s27 = scalar_lea.vmem %s867_s25, 512 }
  0x42   : > { %421 = vperm.xlu1 %814, %v299_v12   ;;  %360 = vmatpush1.bf16.msra.mxu0 %v723_v11  ;;  %p869_p6 = scmp.lt.s32.totalorder %s1177_s24, %s867_s25  ;;  %p870_p13 = scmp.lt.s32.totalorder %s868_s27, %s862_s13 }
  0x43   : > { %v928_v16 = vcombine.low %v926_v14, %v927_v15  ;;  %v929_v17 = vcombine.high %v926_v14, %v927_v15  ;;  %p865_p0 = pneg %p864_p11 }
  0x44   : > { %p871_p2 = por %p870_p13, %p869_p6 }
  0x45   : > { %v935_v24 = vrot.slane %v928_v16, %v934_v23  ;;  %v941_v25 = vrot.slane %v929_v17, %v934_v23  ;;  %725 = vmatmul.mubr.msk.bf16.vlgmr.msra.gmra.mrb[0].mxu0 %vm278_vm0, %v819_v13 }
  0x46   : > { %v484_v26 = vld [vmem:[%s1146_s28] sm:$0xff]  ;;  %p872_p5 = pnand %p871_p2, %p865_p0 }
  0x47   : > { %v311_v27 = vrot.slane %v935_v24, 4  ;;  %v320_v28 = vrot.slane %v941_v25, 4 }
  0x48   : > { %740 = vmatpush1.bf16.xpose.msra.mxu1 %v723_v11 }
  0x49   : > { %v312_v29 = vadd.f32 %v935_v24, %v311_v27  ;;  %v321_v30 = vadd.f32 %v941_v25, %v320_v28 }
  0x4b   : > { %v313_v31 = vrot.slane %v312_v29, 2  ;;  %v322_v32 = vrot.slane %v321_v30, 2 }
  0x4d   : > { %v314_v33 = vadd.f32 %v313_v31, %v312_v29  ;;  %v323_v34 = vadd.f32 %v322_v32, %v321_v30 }
  0x4f   : > { %v315_v35 = vrot.slane %v314_v33, 1  ;;  %v324_v37 = vrot.slane %v323_v34, 1 }
  0x51   : > { %v316_v38 = vadd.f32 %v315_v35, %v314_v33  ;;  %v325_v39 = vadd.f32 %v324_v37, %v323_v34 }
  0xbc   : > { %v403_v36 = vpop.permute.xlu0 %402 }
  0xbd   : > { %v417_v40 = vpop.permute.xlu1 %416  ;;  %v410_v41 = vmul.f32 %v403_v36, %v316_v38  ;;  %v411_v43 = vmul.f32 %v403_v36, %v325_v39 }
  0xbf   : > { %v424_v44 = vadd.f32 %v417_v40, %v410_v41  ;;  %v425_v48 = vadd.f32 %v417_v40, %v411_v43 }
  0xc0   : > { %v408_v42 = vpop.permute.xlu0 %407 }
  0xc1   : > { %v412_v45 = vmul.f32 %v408_v42, %v316_v38  ;;  %v413_v46 = vmul.f32 %v408_v42, %v325_v39  ;;  %v422_v47 = vpop.permute.xlu1 %421 }
  0xc3   : > { %v426_v50 = vadd.f32 %v422_v47, %v412_v45  ;;  %v427_v53 = vadd.f32 %v422_v47, %v413_v46 }
 0x118   : > { %v391_v49 = vpop.f32.mrb[0].mxu0 }
 0x119   : > { %v428_v51 = vsub.f32 %v424_v44, %v391_v49  ;;  %v393_v52 = vpop.f32.mrb[1].mxu0 }
 0x11a   : > { %v429_v54 = vsub.f32 %v425_v48, %v393_v52  ;;  %v395_v55 = vpop.f32.mrb[2].mxu0 }
 0x11b   : > { %v430_v56 = vsub.f32 %v426_v50, %v395_v55  ;;  %v397_v57 = vpop.f32.mrb[3].mxu0  ;;  %v566_v50 = vld [vmem:[#allocation2 + $0x8] sm:$0xff] }
 0x11c   : > { %v431_v58 = vsub.f32 %v427_v53, %v397_v57 }
 0x11d   : > { %v432_v59 = vmax.f32 %v428_v51, %v430_v56 }
 0x11e   : > { %v439_v60 = vmax.f32 %v429_v54, %v431_v58 }
 0x11f   : > { %v433_v61 = vrot.slane %v432_v59, 4 }
 0x120   : > { %v440_v62 = vrot.slane %v439_v60, 4 }
 0x121   : > { %v434_v63 = vmax.f32 %v432_v59, %v433_v61  ;;  %v485_v61 = vld [vmem:[%s1146_s28 + $0x8] sm:$0xff] }
 0x122   : > { %v441_v0 = vmax.f32 %v439_v60, %v440_v62 }
 0x123   : > { %v435_v1 = vrot.slane %v434_v63, 2 }
 0x124   : > { %v442_v2 = vrot.slane %v441_v0, 2 }
 0x125   : > { %v436_v3 = vmax.f32 %v434_v63, %v435_v1  ;;  %v584_v1 = vld [vmem:[%s1232_s2 + $0x8] sm:$0xff] }
 0x126   : > { %v443_v4 = vmax.f32 %v441_v0, %v442_v2  ;;  %v583_v2 = vld [vmem:[%s1232_s2] sm:$0xff] }
 0x127   : > { %v437_v5 = vrot.slane %v436_v3, 1 }
 0x128   : > { %v444_v6 = vrot.slane %v443_v4, 1 }
 0x129   : > { %v438_v7 = vmax.f32 %v436_v3, %v437_v5 }
 0x12a   : > { %v445_v8 = vmax.f32 %v443_v4, %v444_v6 }
 0x12b   : > { %v446_v9 = vsub.f32 %v428_v51, %v438_v7  ;;  %v448_v10 = vsub.f32 %v430_v56, %v438_v7  ;;  %v565_v51 = vld [vmem:[#allocation2] sm:$0xff] }
 0x12c   : > { %v447_v11 = vsub.f32 %v429_v54, %v445_v8  ;;  %v449_v12 = vsub.f32 %v431_v58, %v445_v8 }
 0x12d   : > { %v450_v13 = vmul.f32 1.442695, %v446_v9  ;;  %v454_v14 = vmul.f32 1.442695, %v448_v10 }
 0x12e   : > { %v452_v15 = vmul.f32 1.442695, %v447_v11  ;;  %v456_v16 = vmul.f32 1.442695, %v449_v12 }
 0x12f   : > { %820 = vpow2.f32 %v450_v13 }
 0x130   : > { %822 = vpow2.f32 %v454_v14 }
 0x131   : > { %824 = vpow2.f32 %v452_v15 }
 0x132   : > { %826 = vpow2.f32 %v456_v16 }
 0x139   : > { %v821_v17 = vpop.eup %820 }
 0x13a   : > { %v823_v18 = vpop.eup %822 }
 0x13b   : > { %v825_v19 = vpop.eup %824  ;;  %v458_v20 = vadd.f32 %v823_v18, %v821_v17 }
 0x13c   : > { %v827_v21 = vpop.eup %826 }
 0x13d   : > { %v465_v22 = vadd.f32 %v827_v21, %v825_v19  ;;  %v459_v23 = vrot.slane %v458_v20, 4 }
 0x13f   : > { %v466_v24 = vrot.slane %v465_v22, 4  ;;  %v460_v25 = vadd.f32 %v459_v23, %v458_v20 }
 0x141   : > { %v467_v27 = vadd.f32 %v466_v24, %v465_v22  ;;  %v461_v28 = vrot.slane %v460_v25, 2 }
 0x143   : > { %v468_v29 = vrot.slane %v467_v27, 2  ;;  %v462_v30 = vadd.f32 %v461_v28, %v460_v25 }
 0x145   : > { %v469_v31 = vadd.f32 %v468_v29, %v467_v27  ;;  %v463_v32 = vrot.slane %v462_v30, 1 }
 0x147   : > { %v470_v33 = vrot.slane %v469_v31, 1  ;;  %v464_v34 = vadd.f32 %v463_v32, %v462_v30 }
 0x149   : > { %v471_v35 = vadd.f32 %v470_v33, %v469_v31  ;;  %828 = vrcp.f32 %v464_v34 }
 0x14b   : > { %830 = vrcp.f32 %v471_v35 }
 0x153   : > { %v829_v36 = vpop.eup %828 }
 0x154   : > { %v474_v37 = vmul.f32 %v829_v36, %v464_v34 }
 0x155   : > { %v831_v38 = vpop.eup %830 }
 0x156   : > { %v475_v39 = vmul.f32 %v831_v38, %v471_v35  ;;  %v476_v40 = vsub.f32 2.0, %v474_v37 }
 0x158   : > { %v477_v41 = vsub.f32 2.0, %v475_v39  ;;  %v478_v42 = vmul.f32 %v829_v36, %v476_v40 }
 0x15a   : > { %v479_v43 = vmul.f32 %v831_v38, %v477_v41  ;;  %v480_v44 = vmul.f32 %v821_v17, %v478_v42  ;;  %v482_v45 = vmul.f32 %v823_v18, %v478_v42 }
 0x15c   : > { %v481_v46 = vmul.f32 %v825_v19, %v479_v43  ;;  %v483_v47 = vmul.f32 %v827_v21, %v479_v43 }
 0x15e   : > { %550 = vmatprep.mubr.f32.mxu1 %v481_v46  ;;  %v570_v48 = vadd.f32 %v483_v47, %v482_v45  ;;  %v567_v49 = vadd.f32 %v481_v46, %v480_v44 }
 0x15f   : > { %551 = vmatmul.mubr.f32.vlgmr.msra.gmra.mrb[0].mxu1 %v480_v44 }
 0x160   : > { %571 = vadd.xlane.f32.xlu1 %v570_v48  ;;  %568 = vadd.xlane.f32.xlu0 %v567_v49 }
 0x161   : > { %555 = vmatprep.mubr.f32.mxu1 %v483_v47 }
 0x163   : > { %556 = vmatmul.mubr.f32.gmra.mrb[2].mxu1 %v482_v45 }
 0x1ed   : > { %v572_v52 = vpop.xlane.xlu1 %571  ;;  %v569_v53 = vpop.xlane.xlu0 %568 }
 0x1ee   : > { %v574_v54 = vadd.f32 %v572_v52, %v566_v50  ;;  %v573_v55 = vadd.f32 %v569_v53, %v565_v51 }
 0x1f0   : > { %577 = vst.msk [vmem:[#allocation2 + $0x8] sm:$0xff] %vm281_vm1, %v574_v54  ;;  %576 = vst.msk [vmem:[#allocation2] sm:$0xff] %vm281_vm1, %v573_v55 }
 0x1f7   : > { %v586_v56 = vld [vmem:[#allocation2 + $0x8] sm:$0xff]  ;;  %v585_v57 = vld [vmem:[#allocation2] sm:$0xff] }
 0x1f8   : > { %594 = vperm.xlu1 %814, %v586_v56   ;;  %589 = vperm.xlu0 %813, %v585_v57  }
 0x232   : > { %v552_v58 = vpop.f32.mrb[0].mxu1 }
 0x233   : > { %v561_v59 = vadd.f32 %v552_v58, %v484_v26  ;;  %v554_v60 = vpop.f32.mrb[1].mxu1 }
 0x235   : > { %563 = vst.msk [vmem:[%s1146_s28] sm:$0xff] %vm278_vm0, %v561_v59 }
 0x236   : > { %v557_v62 = vpop.f32.mrb[2].mxu1 }
 0x237   : > { %v562_v63 = vadd.f32 %v557_v62, %v485_v61  ;;  %v559_v0 = vpop.f32.mrb[3].mxu1 }
 0x239   : > { %564 = vst.msk [vmem:[%s1146_s28 + $0x8] sm:$0xff] %vm278_vm0, %v562_v63 }
 0x23c   : > { %v581_v8 = vld [vmem:[%s1146_s28] sm:$0xff] }
 0x240   : > { %v582_v7 = vld [vmem:[%s1146_s28 + $0x8] sm:$0xff] }
 0x277   : > { %v595_v3 = vpop.permute.xlu1 %594  ;;  %v590_v4 = vpop.permute.xlu0 %589 }
 0x278   : > { %v598_v5 = vmul.f32 %v595_v3, %v584_v1  ;;  %v597_v6 = vmul.f32 %v590_v4, %v583_v2 }
 0x27a   : > { %v600_v9 = vsub.f32 %v582_v7, %v598_v5  ;;  %v599_v10 = vsub.f32 %v581_v8, %v597_v6 }
 0x27c   : > { %602 = vst.msk [vmem:[%s1146_s28 + $0x8] sm:$0xff] %vm278_vm0, %v600_v9  ;;  %601 = vst.msk [vmem:[%s1146_s28] sm:$0xff] %vm278_vm0, %v599_v10 }
 0x27d   : > { %875 = shalt.err (!%p872_p5)
}
 0x27e   : > { %s876_s28 = scalar_lea.hbm %s1175_s12, 256  ;;  %s880_s14 = scalar_lea.hbm %s1235_s5, 512 }
 0x27f   : > { %p877_p4 = scmp.ne.s32.totalorder %s1175_s12, %s876_s28  ;;  %p881_p12 = scmp.lt.u32.totalorder %s1175_s12, %s1235_s5 }
 0x280   : > { %p882_p1 = scmp.lt.u32.totalorder %s880_s14, %s876_s28  ;;  %p884_p8 = scmp.lt.u32.totalorder %s876_s28, %s1175_s12 }
 0x281   : > { %p878_p7 = pnand %p877_p4, %p1243_p9 }
 0x282   : > { %p883_p3 = por %p882_p1, %p881_p12 }
 0x283   : > { %p879_p10 = pneg %p878_p7 }
 0x284   : > { %p885_p11 = por %p884_p8, %p883_p3 }
 0x286   : > { %p886_p0 = pnand %p885_p11, %p879_p10 }
 0x288   : > { %889 = shalt.err (!%p886_p0)
}
 0x289   : > { %s973_s30 = smov 128   ;;  %s974_s9 = smov 8  }
 0x28a   : > { %747 = dma.vmem_to_hbm [thread:$0]  (%p1243_p9), %s1177_s24, 256, %s1175_s12, %s604_s21, %s973_s30, %s973_s30, %s974_s9  }
 0x28b PF: > { %s634_s13 = sand.u32 1, %s944_s18   ;;  %p1244_p6 = scmp.ne.s32.totalorder %s1240_s8, 0 }
 0x28c   : > { %p1245_p13 = scmp.ge.s32.totalorder %s964_s23, 2  ;;  %s635_s15 = scalar_lea.sflag [#allocation5], %s634_s13 }
 0x28e   : > { %p754_p2 = pnand %p1245_p13, %p1244_p6 }
 0x290   : > { %919 = dma.done.wait (!%p754_p2), %s635_s15, 256  }
 0x291   : > { %921 = vsyncadd (!%p754_p2), %s635_s15, 4294967040  ;;  %s21_s23 = sadd.s32 1, %s964_s23   ;;  %s1246_s18 = smov %s948_s19 }
 0x292   : > { %p18_p5 = scmp.ge.s32.totalorder %s21_s23, 4   ;;  %s1247_s19 = smov %s952_s20 }
 0x293   : > { %s1248_s20 = smov %s1061_s7  ;;  %s1249_s21 = smov %s960_s22 }
 0x294   : > { %s1250_s22 = smov %s1252_s26  ;;  %20 = sbr.rel (!%p18_p5) target bundleno = 6 (0x6), region = 93 }
 0x29b   :  { %640 = vsyncpa [#allocation4], 1 }
 0x29c   :  { %642 = vsyncpa [#allocation4 + $0x1], 1 }
 0x29d   :  { %643 = vsyncpa [#allocation5], 1 }
 0x29e   :  { %645 = vsyncpa [#allocation5 + $0x1], 1 }

</bundles_post_ra>
